<compile_context>
chip_gen: v7x
topology: tpu7x:2x2x1
jax: 0.10.0
libtpu: 0.0.40
codegen_flags: <defaults>
</compile_context>

<pallas_src>
import functools
import math

import jax
import jax.numpy as jnp
from jax.experimental import pallas as pl
from jax.experimental.pallas import tpu as pltpu


def _round_up(x, m):
    return ((x + m - 1) // m) * m


def _largest_divisor_multiple(dim, pref, mult):
    """Largest t <= pref with dim % t == 0 and t % mult == 0, else None."""
    t = (min(pref, dim) // mult) * mult
    while t >= mult:
        if dim % t == 0:
            return t
        t -= mult
    return None


def _dqlinear_kernel(a_ref, w_ref, scale_ref, bias_ref, o_ref, *, gs, tkh):
    # a_ref:     (tm, 2*tkh) bf16   contiguous K-slice of activations (lo half, then hi half)
    # w_ref:     (tkh, tn)   int8   repacked bytes: low nibble -> K rows [0,tkh), high -> [tkh,2tkh)
    # scale_ref: (2*g_tile, tn) f32 group scales for this K-tile (lo groups first, then hi groups)
    # bias_ref:  (1, tn)     f32
    # o_ref:     (tm, tn)    f32    resident accumulator across the k grid axis
    k = pl.program_id(2)

    @pl.when(k == 0)
    def _init():
        o_ref[...] = jnp.broadcast_to(bias_ref[...], o_ref.shape)

    tn = w_ref.shape[1]
    g_tile = tkh // gs

    w = w_ref[...].astype(jnp.int32)              # widen packed bytes in-kernel only
    scale = scale_ref[...].astype(jnp.bfloat16)   # (2*g_tile, tn)

    def dequant(nib_i32, sc):                     # sc: (g_tile, tn) bf16
        nb = nib_i32.astype(jnp.bfloat16)         # nibbles are exact in bf16
        return (nb.reshape(g_tile, gs, tn) * sc[:, None, :]).reshape(tkh, tn)

    w_lo = dequant((w & 15) - 8, scale[:g_tile, :])            # low nibble rows
    w_hi = dequant(((w >> 4) & 15) - 8, scale[g_tile:, :])     # high nibble rows (mask after shift)

    acc = jnp.dot(a_ref[:, :tkh], w_lo, preferred_element_type=jnp.float32)
    acc = acc + jnp.dot(a_ref[:, tkh:], w_hi, preferred_element_type=jnp.float32)
    o_ref[...] += acc


def dynamic_quantize_linear(x, weight_packed_u8, weight_scale, bias=None,
                            *, tm=None, tn=None, tkh=None):
    """out = x @ unpack_int4(weight_packed_u8, weight_scale) + bias"""
    *lead, K = x.shape
    Kh, N = weight_packed_u8.shape
    assert Kh * 2 == K
    G = weight_scale.shape[0]
    assert K % G == 0
    gs = K // G
    # TODO(synk): an odd group count (Kh % group_size != 0) would need a different nibble
    # repacking; chatglm int4 layer shapes always give an even number of groups.
    assert Kh % gs == 0, "number of quantization groups must be even"

    a = x.reshape(-1, K)
    M = a.shape[0]

    # ---- VMEM budget -------------------------------------------------------
    try:
        vmem_cap = pltpu.get_tpu_info().vmem_capacity_bytes
    except Exception:
        vmem_cap = 64 * 1024 * 1024            # conservative (v7x-sized) fallback
    vmem_limit = min((vmem_cap * 3) // 4, 96 * 1024 * 1024)
    budget = (vmem_limit * 3) // 4

    # ---- tile selection ----------------------------------------------------
    # tkh must divide Kh; either tkh == Kh, or tkh % 128 == 0 and (tkh//gs) % 4 == 0
    # (keeps the activation / weight / scale block layouts (8,128)-legal).
    tkh_base = math.lcm(128, 4 * gs)
    if tm is None:
        tm = min(512, _round_up(max(M, 32), 32))
    if tn is None:
        tn = (_largest_divisor_multiple(N, 512, 256)       # v6e/v7x MXU passes are 256 wide
              or _largest_divisor_multiple(N, 512, 128)
              or N)
    if tkh is None:
        tkh = _largest_divisor_multiple(Kh, 1024, tkh_base) or Kh

    def _est(tm_, tn_, tkh_):
        a_blk = tm_ * 2 * tkh_ * 2                       # bf16 activations
        w_blk = tkh_ * tn_                               # int8 packed weight
        s_blk = 2 * (tkh_ // gs) * tn_ * 4               # f32 scales
        o_blk = tm_ * tn_ * 4                            # f32 output block
        temps = 2 * tkh_ * tn_ * 8                       # i32 nibbles + bf16 dequant temporaries
        return 2 * (a_blk + w_blk + s_blk + tn_ * 4 + o_blk) + temps

    for _ in range(16):                                  # shrink until the plan fits VMEM
        if _est(tm, tn, tkh) <= budget:
            break
        t = _largest_divisor_multiple(Kh, tkh // 2, tkh_base) if tkh > tkh_base else None
        if t:
            tkh = t
            continue
        t = (_largest_divisor_multiple(N, tn // 2, 256)
             or _largest_divisor_multiple(N, tn // 2, 128)) if tn > 128 else None
        if t:
            tn = t
            continue
        if tm > 32:
            tm = max(32, _round_up(tm // 2, 32))
            continue
        break

    M_pad = _round_up(M, tm)

    # Keep >= 2 blocks along a parallel axis when possible (both v7x TensorCores get work).
    if M_pad // tm < 2 and N // tn < 2:
        t = _largest_divisor_multiple(N, tn // 2, 128)
        if t:
            tn = t

    assert Kh % tkh == 0 and N % tn == 0 and tkh % gs == 0
    g_tile = tkh // gs
    nkb = Kh // tkh
    assert 2 * g_tile % 8 == 0 or 2 * g_tile == G

    # ---- host-side glue ----------------------------------------------------
    # Repack the static int4 weight so that within each K-tile the low nibbles hold the
    # first tkh activation columns and the high nibbles the next tkh columns; activations
    # are then consumed contiguously by the kernel. In production this is a one-time
    # offline transform of the checkpoint, not a per-call cost.
    w32 = weight_packed_u8.astype(jnp.int32)
    lo_n = w32 & 15
    hi_n = (w32 >> 4) & 15
    wq = jnp.stack([lo_n, hi_n], axis=1).reshape(K, N)          # nibbles, original K order
    wq = wq.reshape(nkb, 2, tkh, N)
    w_repacked = (wq[:, 0] | (wq[:, 1] << 4)).astype(jnp.uint8).reshape(Kh, N)
    w_i8 = jax.lax.bitcast_convert_type(w_repacked, jnp.int8)   # stay 8-bit in HBM/VMEM

    a = a.astype(jnp.bfloat16)
    if M_pad != M:
        a = jnp.pad(a, ((0, M_pad - M), (0, 0)))

    scale_f32 = weight_scale.astype(jnp.float32)
    if bias is None:
        bias = jnp.zeros((N,), jnp.float32)
    bias_2d = bias.reshape(1, N).astype(jnp.float32)

    grid = (M_pad // tm, N // tn, nkb)

    cost = pl.CostEstimate(
        flops=2 * M_pad * K * N,
        transcendentals=0,
        bytes_accessed=M_pad * K * 2 + Kh * N + G * N * 4 + N * 4 + M_pad * N * 4)

    # TODO(synk): pipeline_mode=pl.Buffered(3) on the weight spec would further hide DMA
    # jitter on the pure weight-stream (decode) path.
    out = pl.pallas_call(
        functools.partial(_dqlinear_kernel, gs=gs, tkh=tkh),
        out_shape=jax.ShapeDtypeStruct((M_pad, N), jnp.float32),
        grid_spec=pltpu.PrefetchScalarGridSpec(
            num_scalar_prefetch=0,
            grid=grid,
            in_specs=[
                pl.BlockSpec((tm, 2 * tkh), lambda i, j, k: (i, k)),      # activations
                pl.BlockSpec((tkh, tn), lambda i, j, k: (k, j)),          # packed int4 weight
                pl.BlockSpec((2 * g_tile, tn), lambda i, j, k: (k, j)),   # group scales
                pl.BlockSpec((1, tn), lambda i, j, k: (0, j)),            # bias
            ],
            out_specs=pl.BlockSpec((tm, tn), lambda i, j, k: (i, j)),
        ),
        compiler_params=pltpu.CompilerParams(
            dimension_semantics=("parallel", "parallel", "arbitrary"),
            vmem_limit_bytes=vmem_limit),
        cost_estimate=cost,
    )(a, w_i8, scale_f32, bias_2d)

    if M_pad != M:
        out = out[:M]
    return out.reshape(*lead, N).astype(x.dtype)


if __name__ == "__main__":
    # Small, module-consistent shapes.
    in_features = 64
    out_features = 128
    group_size = 32              # DEFAULT_GROUP_SIZE
    groups = in_features // group_size
    batch, seq = 2, 8            # M = 16 activation rows

    key = jax.random.PRNGKey(0)
    kx, kw, ks, kb = jax.random.split(key, 4)

    x = jax.random.normal(kx, (batch, seq, in_features), dtype=jnp.float32)
    weight_packed = jax.random.randint(
        kw, (in_features // 2, out_features), 0, 256, dtype=jnp.int32).astype(jnp.uint8)
    weight_scale = jax.random.uniform(
        ks, (groups, out_features), dtype=jnp.float32, minval=0.005, maxval=0.05)
    bias = jax.random.normal(kb, (out_features,), dtype=jnp.float32)

    out = dynamic_quantize_linear(x, weight_packed, weight_scale, bias)
    out = jax.block_until_ready(out)
    assert out.shape == (batch, seq, out_features)

    # Reference 1: mirrors the kernel numerics (bf16 activations, bf16 dequantized
    # weights, f32 accumulation).
    K, N, gs = in_features, out_features, group_size
    w32 = weight_packed.astype(jnp.int32)
    wq = jnp.stack([(w32 & 15) - 8, ((w32 >> 4) & 15) - 8], axis=1).reshape(K, N)
    sc_exp = jnp.repeat(weight_scale, gs, axis=0)                                # (K, N)
    w_bf = (wq.astype(jnp.bfloat16) * sc_exp.astype(jnp.bfloat16)).astype(jnp.float32)
    a_bf = x.reshape(-1, K).astype(jnp.bfloat16).astype(jnp.float32)
    ref_bf = (a_bf @ w_bf + bias).reshape(batch, seq, N)
    assert jnp.allclose(out, ref_bf, atol=1e-2, rtol=1e-2), (
        float(jnp.max(jnp.abs(out - ref_bf))))

    # Reference 2: full-f32 module semantics (loose tolerance for bf16 rounding).
    w_f32 = wq.astype(jnp.float32) * sc_exp
    ref_f32 = (x.reshape(-1, K) @ w_f32 + bias).reshape(batch, seq, N)
    assert float(jnp.max(jnp.abs(out - ref_f32))) < 0.15

    print("KERNEL_OK")
</pallas_src>

<mosaic_0001>
module attributes {stable_mosaic.version = 11 : i64} {
  func.func @_dqlinear_kernel(%arg0: i32, %arg1: i32, %arg2: i32, %arg3: memref<32x64xbf16, #tpu.memory_space<vmem>>, %arg4: memref<32x128xi8, #tpu.memory_space<vmem>>, %arg5: memref<2x128xf32, #tpu.memory_space<vmem>>, %arg6: memref<1x128xf32, #tpu.memory_space<vmem>>, %arg7: memref<32x128xf32, #tpu.memory_space<vmem>>) attributes {dimension_semantics = [#tpu.dimension_semantics<parallel>, #tpu.dimension_semantics<parallel>, #tpu.dimension_semantics<arbitrary>], iteration_bounds = array<i64: 1, 1, 1>, scalar_prefetch = 0 : i64, scratch_operands = 0 : i64, tpu.core_type = #tpu.core_type<tc>, window_params = [{transform_indices = @transform_0, window_bounds = array<i64: 32, 64>}, {transform_indices = @transform_1, window_bounds = array<i64: 32, 128>}, {transform_indices = @transform_2, window_bounds = array<i64: 2, 128>}, {transform_indices = @transform_3, window_bounds = array<i64: 1, 128>}, {transform_indices = @transform_4, window_bounds = array<i64: 32, 128>}]} {
    %c0_i32 = arith.constant 0 : i32
    %0 = arith.cmpi eq, %arg2, %c0_i32 : i32
    %1 = arith.extui %0 : i1 to i32
    %c0_i32_0 = arith.constant 0 : i32
    %2 = arith.cmpi ne, %1, %c0_i32_0 : i32
    scf.if %2 {
      %c0_14 = arith.constant 0 : index
      %c0_15 = arith.constant 0 : index
      %39 = vector.load %arg6[%c0_14, %c0_15] : memref<1x128xf32, #tpu.memory_space<vmem>>, vector<1x128xf32>
      %40 = vector.shape_cast %39 : vector<1x128xf32> to vector<1x128xf32>
      %41 = vector.broadcast %40 : vector<1x128xf32> to vector<32x128xf32>
      %c0_16 = arith.constant 0 : index
      %c0_17 = arith.constant 0 : index
      %42 = vector.load %arg7[%c0_16, %c0_17] : memref<32x128xf32, #tpu.memory_space<vmem>>, vector<32x128xf32>
      tpu.vector_store %arg7[%c0_16, %c0_17], %41 {strides = array<i32>} : memref<32x128xf32, #tpu.memory_space<vmem>>, vector<32x128xf32>,
    } else {
    }
    %c0 = arith.constant 0 : index
    %c0_1 = arith.constant 0 : index
    %3 = vector.load %arg4[%c0, %c0_1] : memref<32x128xi8, #tpu.memory_space<vmem>>, vector<32x128xi8>
    %4 = arith.extsi %3 : vector<32x128xi8> to vector<32x128xi32>
    %c0_2 = arith.constant 0 : index
    %c0_3 = arith.constant 0 : index
    %5 = vector.load %arg5[%c0_2, %c0_3] : memref<2x128xf32, #tpu.memory_space<vmem>>, vector<2x128xf32>
    %6 = arith.truncf %5 : vector<2x128xf32> to vector<2x128xbf16>
    %c15_i32 = arith.constant 15 : i32
    %7 = vector.broadcast %c15_i32 : i32 to vector<32x128xi32>
    %8 = arith.andi %4, %7 : vector<32x128xi32>
    %c8_i32 = arith.constant 8 : i32
    %9 = vector.broadcast %c8_i32 : i32 to vector<32x128xi32>
    %10 = arith.subi %8, %9 : vector<32x128xi32>
    %11 = vector.extract_strided_slice %6 {offsets = [0, 0], sizes = [1, 128], strides = [1, 1]} : vector<2x128xbf16> to vector<1x128xbf16>
    %12 = arith.sitofp %10 : vector<32x128xi32> to vector<32x128xbf16>
    %13 = vector.shape_cast %12 : vector<32x128xbf16> to vector<1x32x128xbf16>
    %14 = vector.shape_cast %11 : vector<1x128xbf16> to vector<1x1x128xbf16>
    %15 = vector.broadcast %14 : vector<1x1x128xbf16> to vector<1x32x128xbf16>
    %16 = arith.mulf %13, %15 : vector<1x32x128xbf16>
    %17 = vector.shape_cast %16 : vector<1x32x128xbf16> to vector<32x128xbf16>
    %c4_i32 = arith.constant 4 : i32
    %18 = vector.broadcast %c4_i32 : i32 to vector<32x128xi32>
    %19 = arith.shrsi %4, %18 : vector<32x128xi32>
    %c15_i32_4 = arith.constant 15 : i32
    %20 = vector.broadcast %c15_i32_4 : i32 to vector<32x128xi32>
    %21 = arith.andi %19, %20 : vector<32x128xi32>
    %c8_i32_5 = arith.constant 8 : i32
    %22 = vector.broadcast %c8_i32_5 : i32 to vector<32x128xi32>
    %23 = arith.subi %21, %22 : vector<32x128xi32>
    %24 = vector.extract_strided_slice %6 {offsets = [1, 0], sizes = [1, 128], strides = [1, 1]} : vector<2x128xbf16> to vector<1x128xbf16>
    %25 = arith.sitofp %23 : vector<32x128xi32> to vector<32x128xbf16>
    %26 = vector.shape_cast %25 : vector<32x128xbf16> to vector<1x32x128xbf16>
    %27 = vector.shape_cast %24 : vector<1x128xbf16> to vector<1x1x128xbf16>
    %28 = vector.broadcast %27 : vector<1x1x128xbf16> to vector<1x32x128xbf16>
    %29 = arith.mulf %26, %28 : vector<1x32x128xbf16>
    %30 = vector.shape_cast %29 : vector<1x32x128xbf16> to vector<32x128xbf16>
    %c0_6 = arith.constant 0 : index
    %c0_7 = arith.constant 0 : index
    %31 = vector.load %arg3[%c0_6, %c0_7] : memref<32x64xbf16, #tpu.memory_space<vmem>>, vector<32x32xbf16>
    %cst = arith.constant dense<0.000000e+00> : vector<32x128xf32>
    %32 = tpu.matmul %31, %17, %cst {dimension_numbers = #tpu.dot_dimension_numbers<[1], [0], [0], [1], [0, 0, 1, 1], [], []>} : vector<32x32xbf16>, vector<32x128xbf16>, vector<32x128xf32> -> vector<32x128xf32>
    %c0_8 = arith.constant 0 : index
    %c32 = arith.constant 32 : index
    %33 = vector.load %arg3[%c0_8, %c32] : memref<32x64xbf16, #tpu.memory_space<vmem>>, vector<32x32xbf16>
    %cst_9 = arith.constant dense<0.000000e+00> : vector<32x128xf32>
    %34 = tpu.matmul %33, %30, %cst_9 {dimension_numbers = #tpu.dot_dimension_numbers<[1], [0], [0], [1], [0, 0, 1, 1], [], []>} : vector<32x32xbf16>, vector<32x128xbf16>, vector<32x128xf32> -> vector<32x128xf32>
    %35 = arith.addf %32, %34 : vector<32x128xf32>
    %c0_10 = arith.constant 0 : index
    %c0_11 = arith.constant 0 : index
    %36 = vector.load %arg7[%c0_10, %c0_11] : memref<32x128xf32, #tpu.memory_space<vmem>>, vector<32x128xf32>
    %37 = arith.addf %36, %35 : vector<32x128xf32>
    %c0_12 = arith.constant 0 : index
    %c0_13 = arith.constant 0 : index
    %38 = vector.load %arg7[%c0_12, %c0_13] : memref<32x128xf32, #tpu.memory_space<vmem>>, vector<32x128xf32>
    tpu.vector_store %arg7[%c0_12, %c0_13], %37 {strides = array<i32>} : memref<32x128xf32, #tpu.memory_space<vmem>>, vector<32x128xf32>,
    return
  }
  func.func @transform_0(%arg0: i32, %arg1: i32, %arg2: i32) -> (i32, i32) {
    %c0_i32 = arith.constant 0 : i32
    return %arg0, %arg2 : i32, i32
  }
  func.func @transform_1(%arg0: i32, %arg1: i32, %arg2: i32) -> (i32, i32) {
    %c0_i32 = arith.constant 0 : i32
    return %arg2, %arg1 : i32, i32
  }
  func.func @transform_2(%arg0: i32, %arg1: i32, %arg2: i32) -> (i32, i32) {
    %c0_i32 = arith.constant 0 : i32
    return %arg2, %arg1 : i32, i32
  }
  func.func @transform_3(%arg0: i32, %arg1: i32, %arg2: i32) -> (i32, i32) {
    %c0_i32 = arith.constant 0 : i32
    %c0_i32_0 = arith.constant 0 : i32
    return %c0_i32, %arg1 : i32, i32
  }
  func.func @transform_4(%arg0: i32, %arg1: i32, %arg2: i32) -> (i32, i32) {
    %c0_i32 = arith.constant 0 : i32
    return %arg0, %arg1 : i32, i32
  }
}

</mosaic_0001>

<bundles_post_ra>
// kernel: tpu_custom_call.1
= control target key start
LH: loop header
LB: loop body
LE: loop exit
PB: predicated region body
PF: predicated region fallthrough
CT: control target
= control target key end

     0   :  { %9 = vsyncpa [#allocation3], 0  ;;  %s480_s0 = inlined_call_operand.hbm [shape: bf16[32,64], index: 0, kind: input, shape index: {}]   ;;  %s481_s1 = inlined_call_operand.hbm [shape: s8[32,128], index: 1, kind: input, shape index: {}]   ;;  %s482_s2 = inlined_call_operand.vmem [shape: f32[2,128], index: 2, kind: input, shape index: {}]   ;;  %s483_s3 = inlined_call_operand.vmem [shape: f32[1,128], index: 3, kind: input, shape index: {}]   ;;  %s484_s4 = inlined_call_operand.hbm [shape: f32[32,128], index: 4, kind: output, shape index: {}]  }
   0x1   :  { %10 = vsyncpa [#allocation6], 0 }
   0x2   :  { %11 = vsyncpa [#allocation4], 0  ;;  %s401_s15 = smov [#allocation2]   ;;  %s329_s19 = scalar_lea.hbm %s480_s0, 256 }
   0x3   :  { %s17_s16 = sshll.u32 %s401_s15, 4  ;;  %p330_p0 = scmp.ne.s32.totalorder %s480_s0, %s329_s19  ;;  %s18_s16 = int_to_ptr.vmem [resolvable:$true] %s17_s16 }
   0x4   :  { %p333_p1 = scmp.lt.u32.totalorder %s329_s19, %s480_s0 }
   0x6   :  { %p335_p2 = pnand %p333_p1, %p330_p0 }
   0x8   :  { %338 = shalt.err (!%p335_p2)
}
   0x9   :  { %s339_s24 = scalar_lea.vmem %s18_s16, 256  ;;  %p344_p4 = scmp.lt.s32.totalorder %s18_s16, %s18_s16 }
   0xa   :  { %p340_p3 = scmp.ne.s32.totalorder %s18_s16, %s339_s24  ;;  %p345_p5 = scmp.lt.s32.totalorder %s339_s24, %s339_s24 }
   0xc   :  { %p346_p6 = por %p345_p5, %p344_p4 }
   0xe   :  { %p347_p7 = pnand %p346_p6, %p340_p3 }
  0x10   :  { %350 = shalt.err (!%p347_p7)
}
  0x11   :  { %s402_s25 = smov 64   ;;  %s403_s26 = smov 4  }
  0x12   :  { %23 = dma.hbm_to_vmem [thread:$0]  %s480_s0, 256, %s18_s16, [#allocation3], %s402_s25, %s402_s25, %s403_s26  }
  0x13   :  { %s404_s29 = smov [#allocation5]   ;;  %s351_s7 = scalar_lea.hbm %s481_s1, 128 }
  0x14   :  { %s30_s30 = sshll.u32 %s404_s29, 4  ;;  %p352_p8 = scmp.ne.s32.totalorder %s481_s1, %s351_s7  ;;  %s31_s30 = int_to_ptr.vmem [resolvable:$true] %s30_s30 }
  0x15   :  { %p355_p9 = scmp.lt.u32.totalorder %s351_s7, %s481_s1 }
  0x17   :  { %p357_p10 = pnand %p355_p9, %p352_p8 }
  0x19   :  { %360 = shalt.err (!%p357_p10)
}
  0x1a   :  { %s361_s12 = scalar_lea.vmem %s31_s30, 128  ;;  %p366_p12 = scmp.lt.s32.totalorder %s31_s30, %s31_s30 }
  0x1b   :  { %p362_p11 = scmp.ne.s32.totalorder %s31_s30, %s361_s12  ;;  %p367_p13 = scmp.lt.s32.totalorder %s361_s12, %s361_s12 }
  0x1d   :  { %p368_p0 = por %p367_p13, %p366_p12 }
  0x1f   :  { %p369_p1 = pnand %p368_p0, %p362_p11 }
  0x21   :  { %372 = shalt.err (!%p369_p1)
}
  0x22   :  { %33 = dma.hbm_to_vmem [thread:$0]  %s481_s1, 128, %s31_s30, [#allocation6]  }
  0x23   :  { %395 = dma.done.wait [#allocation3], 256  }
  0x24   :  { %396 = vsyncadd [#allocation3], 4294967040 }
  0x25   :  { %397 = dma.done.wait [#allocation6], 128  }
  0x26   :  { %398 = vsyncadd [#allocation6], 4294967168  ;;  %v84_v0 = vlaneseq  ;;  %vm135_vm0 = vcmask 261120   ;;  %v327_v2 = vld [vmem:[#allocation2] sm:$0xff]   ;;  %s405_s14 = smov 96   ;;  %v328_v3 = vld [vmem:[#allocation2 + $0x8] sm:$0xff]  }
  0x27   :  { %131 = vrot.lane.b32.xlu0 %v327_v2, %s405_s14  ;;  %v60_v4 = vld [vmem:[#allocation5] sm:$0xff]  ;;  %v65_v5 = vld [vmem:[%s482_s2] sm:$0x3]  ;;  %311 = vmatprep.mubr.msk.bf16.mxu0 %vm135_vm0, %v327_v2  ;;  %s406_s17 = smov [#allocation7]  }
  0x28   :  { %v85_v1 = vshrl.u32 %v84_v0, 7  ;;  %v61_v7 = vunpack.c.0.s8 %v60_v4  ;;  %v62_v8 = vunpack.c.1.s8 %v60_v4  ;;  %v66_v9 = vpack.c.bf16 %v65_v5, %v65_v5  ;;  %v276_v59 = vld [vmem:[%s483_s3] ss:$0 sm:$0xff]  ;;  %s263_s18 = sshll.u32 %s406_s17, 4  ;;  %s264_s18 = int_to_ptr.vmem [resolvable:$true] %s263_s18 }
  0x29   :  { %v63_v10 = vunpack.c.2.s8 %v60_v4  ;;  %v64_v11 = vunpack.c.3.s8 %v60_v4  ;;  %s373_s3 = scalar_lea.vmem %s264_s18, 512  ;;  %p378_p3 = scmp.lt.s32.totalorder %s264_s18, %s264_s18 }
  0x2a   :  { %v86_v6 = vsub.s32 0, %v85_v1  ;;  %v67_v12 = vand.u32 15, %v61_v7  ;;  %v68_v13 = vand.u32 15, %v62_v8  ;;  %v82_v14 = vpack.i.b16 %v66_v9, %v66_v9  ;;  %p374_p2 = scmp.ne.s32.totalorder %s264_s18, %s373_s3  ;;  %p379_p4 = scmp.lt.s32.totalorder %s373_s3, %s373_s3 }
  0x2b   :  { %v90_v15 = vshra.s32 %v61_v7, 4  ;;  %133 = vrot.lane.b32.xlu0 %v328_v3, %s405_s14  ;;  %v91_v16 = vshra.s32 %v62_v8, 4  ;;  %v108_v17 = vshrl.u32 %v66_v9, 16  ;;  %v69_v18 = vand.u32 15, %v63_v10 }
  0x2c   :  { %v70_v19 = vand.u32 15, %v64_v11  ;;  %v277_v20 = vadd.s32 4294967288, %v67_v12  ;;  %v278_v21 = vadd.s32 4294967288, %v68_v13  ;;  %v87_v22 = vrot.slane %v82_v14, %v86_v6  ;;  %p380_p5 = por %p379_p4, %p378_p3 }
  0x2d   :  { %v94_v23 = vand.u32 15, %v90_v15  ;;  %v95_v24 = vand.u32 15, %v91_v16  ;;  %v109_v25 = vpack.i.b16 %v108_v17, %v108_v17  ;;  %v279_v26 = vadd.s32 4294967288, %v69_v18 }
  0x2e   :  { %v280_v27 = vadd.s32 4294967288, %v70_v19  ;;  %v75_v28 = vcvt.s32.f32 %v277_v20  ;;  %v76_v29 = vcvt.s32.f32 %v278_v21  ;;  %v92_v31 = vshra.s32 %v63_v10, 4  ;;  %p381_p6 = pnand %p380_p5, %p374_p2 }
  0x2f   :  { %v281_v30 = vadd.s32 4294967288, %v94_v23  ;;  %v282_v32 = vadd.s32 4294967288, %v95_v24  ;;  %v77_v33 = vcvt.s32.f32 %v279_v26  ;;  %v93_v37 = vshra.s32 %v64_v11, 4 }
  0x30   :  { %v78_v34 = vcvt.s32.f32 %v280_v27  ;;  %v79_v35 = vpack.c.bf16 %v76_v29, %v75_v28  ;;  %v96_v38 = vand.u32 15, %v92_v31  ;;  %v114_v40 = vrot.slane %v109_v25, %v86_v6 }
  0x31   :  { %v102_v36 = vcvt.s32.f32 %v281_v30  ;;  %v103_v39 = vcvt.s32.f32 %v282_v32  ;;  %v97_v43 = vand.u32 15, %v93_v37 }
  0x32   :  { %v80_v41 = vpack.c.bf16 %v78_v34, %v77_v33  ;;  %v88_v42 = vmul.bf16 %v87_v22, %v79_v35  ;;  %v283_v44 = vadd.s32 4294967288, %v96_v38 }
  0x33   :  { %v106_v45 = vpack.c.bf16 %v103_v39, %v102_v36  ;;  %v284_v47 = vadd.s32 4294967288, %v97_v43 }
  0x34   :  { %v89_v46 = vmul.bf16 %v87_v22, %v80_v41  ;;  %307 = vmatprep.subr.bf16.mxu0 %v88_v42  ;;  %v104_v48 = vcvt.s32.f32 %v283_v44 }
  0x35   :  { %308 = vmatpush3.bf16.msra.mxu0 %v88_v42  ;;  %v115_v49 = vmul.bf16 %v114_v40, %v106_v45  ;;  %v105_v50 = vcvt.s32.f32 %v284_v47 }
  0x36   :  { %309 = vmatprep.subr.bf16.mxu0 %v89_v46 }
  0x37   :  { %299 = vmatprep.subr.bf16.mxu1 %v115_v49  ;;  %v107_v51 = vpack.c.bf16 %v105_v50, %v104_v48 }
  0x38   :  { %300 = vmatpush3.bf16.msra.mxu1 %v115_v49 }
  0x39   :  { %310 = vmatpush3.bf16.msra.mxu0 %v89_v46  ;;  %v116_v52 = vmul.bf16 %v114_v40, %v107_v51 }
  0x3b   :  { %301 = vmatprep.subr.bf16.mxu1 %v116_v52 }
  0x3c   :  { %312 = vmatmul.mubr.msk.bf16.vlgmr.msra.gmra.mrb[0].mxu0 %vm135_vm0, %v328_v3  ;;  %302 = vmatpush3.bf16.msra.mxu1 %v116_v52 }
  0x99   :  { %v132_v53 = vpop.permute.xlu0 %131 }
  0x9a   :  { %303 = vmatprep.mubr.msk.bf16.mxu1 %vm135_vm0, %v132_v53 }
  0x9d   :  { %v134_v54 = vpop.permute.xlu0 %133 }
  0x9e   :  { %304 = vmatmul.mubr.msk.bf16.vlgmr.msra.gmra.mrb[0].mxu1 %vm135_vm0, %v134_v54 }
 0x10f   :  { %v313_v55 = vpop.f32.mrb[0].mxu0 }
 0x110   :  { %v231_v56 = vpop.f32.mrb[1].mxu0 }
 0x111   :  { %v314_v57 = vpop.f32.mrb[2].mxu0 }
 0x112   :  { %v234_v58 = vpop.f32.mrb[3].mxu0 }
 0x171   :  { %v305_v60 = vpop.f32.mrb[0].mxu1 }
 0x172   :  { %v240_v61 = vadd.f32 %v313_v55, %v305_v60  ;;  %v176_v62 = vpop.f32.mrb[1].mxu1 }
 0x173   :  { %v232_v63 = vadd.f32 %v231_v56, %v176_v62  ;;  %v306_v0 = vpop.f32.mrb[2].mxu1 }
 0x174   :  { %v252_v1 = vadd.f32 %v276_v59, %v240_v61  ;;  %v243_v2 = vadd.f32 %v314_v57, %v306_v0  ;;  %v179_v3 = vpop.f32.mrb[3].mxu1 }
 0x175   :  { %v250_v4 = vadd.f32 %v276_v59, %v232_v63  ;;  %v235_v5 = vadd.f32 %v234_v58, %v179_v3 }
 0x176   :  { %256 = vst [vmem:[#allocation7 + $0x10] sm:$0xff] %v252_v1  ;;  %v253_v6 = vadd.f32 %v276_v59, %v243_v2 }
 0x177   :  { %254 = vst [vmem:[#allocation7] sm:$0xff] %v250_v4  ;;  %v251_v7 = vadd.f32 %v276_v59, %v235_v5 }
 0x178   :  { %257 = vst [vmem:[#allocation7 + $0x18] sm:$0xff] %v253_v6 }
 0x179   :  { %255 = vst [vmem:[#allocation7 + $0x8] sm:$0xff] %v251_v7 }
 0x17a   :  { %384 = shalt.err (!%p381_p6)
}
 0x17b   :  { %s385_s21 = scalar_lea.hbm %s484_s4, 512 }
 0x17c   :  { %p386_p7 = scmp.ne.s32.totalorder %s484_s4, %s385_s21  ;;  %p389_p8 = scmp.lt.u32.totalorder %s385_s21, %s484_s4 }
 0x17e   :  { %p391_p9 = pnand %p389_p8, %p386_p7 }
 0x180   :  { %394 = shalt.err (!%p391_p9)
}
 0x181   :  { %s407_s26 = smov 128   ;;  %s408_s27 = smov 8  }
 0x182   :  { %269 = dma.vmem_to_hbm [thread:$0]  %s264_s18, 512, %s484_s4, [#allocation4], %s407_s26, %s407_s26, %s408_s27  }
 0x183   :  { %399 = dma.done.wait [#allocation4], 512  }
 0x184   :  { %400 = vsyncadd [#allocation4], 4294966784 }
 0x185   :  { %273 = vsyncpa [#allocation3], 1 }
 0x186   :  { %274 = vsyncpa [#allocation6], 1 }
 0x187   :  { %275 = vsyncpa [#allocation4], 1 }

</bundles_post_ra>
